<compile_context>
chip_gen: v6e
topology: v6e:2x2x1
jax: 0.10.0
libtpu: 0.0.40
codegen_flags: <defaults>
</compile_context>

<pallas_src>
import math

import jax
import jax.numpy as jnp
from jax.experimental import pallas as pl
from jax.experimental.pallas import tpu as pltpu


def _round_up(x: int, m: int) -> int:
    return pl.cdiv(x, m) * m


def _lora_kernel(x_ref, wd_ref, wu_ref, b_ref, o_ref, h_acc):
    """One (batch-tile, k-tile) grid step.

    x_ref : (TM, TK)     bf16  activation tile (streams)
    wd_ref: (TK, rank)   bf16  lora_down weight K-slab
    wu_ref: (rank, OCp)  f32   lora_up weight (resident)
    b_ref : (1, OCp)     f32   lora_up bias   (resident)
    o_ref : (TM, OCp)    f32   output tile (written on last k step)
    h_acc : (TM, rank)   f32   VMEM accumulator for x @ wd
    """
    k = pl.program_id(1)

    @pl.when(k == 0)
    def _init():
        h_acc[...] = jnp.zeros_like(h_acc)

    # lora_down (no bias): accumulate partial products over in_channels tiles.
    h_acc[...] += jnp.dot(x_ref[...], wd_ref[...], preferred_element_type=jnp.float32)

    @pl.when(k == pl.num_programs(1) - 1)
    def _finalize():
        # lora_up + bias + ReLU, on the f32 accumulator.
        y = jnp.dot(h_acc[...], wu_ref[...], preferred_element_type=jnp.float32)
        y = y + b_ref[...]
        o_ref[...] = jnp.maximum(y, 0.0).astype(o_ref.dtype)


def lora_linear_forward(x, wd, wu, b, *, tm=512, tk_max=2048,
                        compute_dtype=jnp.bfloat16):
    """Fused LoRA linear forward.

    Args:
      x : (B, ...) input; flattened to (B, in_channels) like torch.flatten(start_dim=1)
      wd: (in_channels, rank)   == lora_down.weight.T
      wu: (rank, out_channels)  == lora_up.weight.T
      b : (out_channels,) or (1, out_channels) == lora_up.bias
    Returns:
      (B, out_channels) float32
    """
    if x.ndim > 2:
        x = x.reshape(x.shape[0], -1)
    B, in_ch = x.shape
    in_ch_w, rank = wd.shape
    rank_w, out_ch = wu.shape
    assert in_ch_w == in_ch and rank_w == rank
    b = b.reshape(1, out_ch)

    # ---- tile sizes --------------------------------------------------------
    tm = min(tm, _round_up(B, 8))          # batch tile (sublane multiple of 8)
    b_pad = _round_up(B, tm)

    if in_ch > tk_max:                     # K-tile the reduction only when needed
        tk = tk_max                        # multiple of 128 lanes
        in_pad = _round_up(in_ch, tk)
    else:
        tk = in_ch                         # full dim -> exempt from (8,128) rule
        in_pad = in_ch

    oc_pad = _round_up(out_ch, 128)        # lane-dense output stores

    # ---- pad + cast operands (zero padding is exact through both matmuls) --
    def pad2(a, rows, cols):
        pr, pc = rows - a.shape[0], cols - a.shape[1]
        return jnp.pad(a, ((0, pr), (0, pc))) if (pr or pc) else a

    x_p = pad2(x.astype(compute_dtype), b_pad, in_pad)
    wd_p = pad2(wd.astype(compute_dtype), in_pad, rank)
    wu_p = pad2(wu.astype(jnp.float32), rank, oc_pad)
    b_p = pad2(b.astype(jnp.float32), 1, oc_pad)

    grid = (b_pad // tm, in_pad // tk)

    # ---- VMEM budget / cost hints ------------------------------------------
    cdt = jnp.dtype(compute_dtype).itemsize
    lane = 128
    vmem_est = (2 * tm * tk * cdt                   # x double buffer
                + 2 * tk * max(rank, lane) * cdt    # wd double buffer
                + 2 * max(rank, 8) * oc_pad * 4     # wu (resident)
                + 2 * 8 * oc_pad * 4                # bias (resident)
                + 2 * tm * oc_pad * 4               # out double buffer
                + tm * max(rank, lane) * 4)         # h accumulator scratch
    vmem_limit = int(min(max(2 * vmem_est, 32 * 1024 * 1024), 64 * 1024 * 1024))

    cost = pl.CostEstimate(
        flops=2 * b_pad * in_pad * rank + 2 * b_pad * rank * oc_pad,
        transcendentals=0,
        bytes_accessed=int(x_p.size * cdt + wd_p.size * cdt
                           + wu_p.size * 4 + b_p.size * 4 + b_pad * oc_pad * 4),
    )

    out = pl.pallas_call(
        _lora_kernel,
        out_shape=jax.ShapeDtypeStruct((b_pad, oc_pad), jnp.float32),
        grid_spec=pltpu.PrefetchScalarGridSpec(
            num_scalar_prefetch=0,
            grid=grid,
            in_specs=[
                pl.BlockSpec((tm, tk), lambda i, k: (i, k)),        # x streams
                pl.BlockSpec((tk, rank), lambda i, k: (k, 0)),      # wd per-k slab
                pl.BlockSpec((rank, oc_pad), lambda i, k: (0, 0)),  # wu resident
                pl.BlockSpec((1, oc_pad), lambda i, k: (0, 0)),     # bias resident
            ],
            out_specs=pl.BlockSpec((tm, oc_pad), lambda i, k: (i, 0)),
            scratch_shapes=[pltpu.VMEM((tm, rank), jnp.float32)],
        ),
        compiler_params=pltpu.CompilerParams(
            dimension_semantics=("parallel", "arbitrary"),
            vmem_limit_bytes=vmem_limit,
        ),
        cost_estimate=cost,
    )(x_p, wd_p, wu_p, b_p)

    return out[:B, :out_ch]


def init_lora_params(key, in_channels, rank, out_channels):
    """Deterministic init matching the module's reset_parameters():
    kaiming_uniform_(a=sqrt(5)) -> bound = 1/sqrt(fan_in);
    lora_up bias ~ U(-1/sqrt(rank), 1/sqrt(rank))."""
    k_down, k_up, k_bias = jax.random.split(key, 3)

    bound_down = 1.0 / math.sqrt(in_channels)  # fan_in of lora_down
    bound_up = 1.0 / math.sqrt(rank)           # fan_in of lora_up

    # PyTorch weights are (out_features, in_features); we keep the transposed layout.
    wd = jax.random.uniform(k_down, (in_channels, rank), jnp.float32,
                            minval=-bound_down, maxval=bound_down)
    wu = jax.random.uniform(k_up, (rank, out_channels), jnp.float32,
                            minval=-bound_up, maxval=bound_up)
    b = jax.random.uniform(k_bias, (1, out_channels), jnp.float32,
                           minval=-bound_up, maxval=bound_up)
    return wd, wu, b


if __name__ == "__main__":
    key = jax.random.PRNGKey(0)
    k_x, k_p = jax.random.split(key)

    # Image-like input, flattened to (B, in_channels) inside the wrapper.
    B, C, H, W = 2, 4, 16, 16            # -> in_channels = 1024
    in_channels = C * H * W
    rank = 8
    out_channels = 16

    x = jax.random.normal(k_x, (B, C, H, W), jnp.float32)
    wd, wu, b = init_lora_params(k_p, in_channels, rank, out_channels)

    fwd = jax.jit(lora_linear_forward)
    out = jax.block_until_ready(fwd(x, wd, wu, b))

    # Pure-JAX reference with the same bf16 cast of the streamed operands, f32 math.
    x2 = x.reshape(B, -1)
    xb = x2.astype(jnp.bfloat16).astype(jnp.float32)
    wdb = wd.astype(jnp.bfloat16).astype(jnp.float32)
    h_ref = jnp.dot(xb, wdb, precision=jax.lax.Precision.HIGHEST)
    ref = jnp.maximum(jnp.dot(h_ref, wu, precision=jax.lax.Precision.HIGHEST) + b, 0.0)

    assert out.shape == (B, out_channels)
    assert out.dtype == jnp.float32
    assert jnp.allclose(out, ref, atol=2e-3, rtol=2e-3), float(jnp.max(jnp.abs(out - ref)))

    print("KERNEL_OK")
</pallas_src>

<mosaic_0001>
module attributes {stable_mosaic.version = 11 : i64} {
  func.func @_lora_kernel(%arg0: i32, %arg1: i32, %arg2: memref<8x1024xbf16, #tpu.memory_space<vmem>>, %arg3: memref<1024x8xbf16, #tpu.memory_space<vmem>>, %arg4: memref<8x128xf32, #tpu.memory_space<vmem>>, %arg5: memref<1x128xf32, #tpu.memory_space<vmem>>, %arg6: memref<8x128xf32, #tpu.memory_space<vmem>>, %arg7: memref<8x8xf32, #tpu.memory_space<vmem>>) attributes {dimension_semantics = [#tpu.dimension_semantics<parallel>, #tpu.dimension_semantics<arbitrary>], iteration_bounds = array<i64: 1, 1>, scalar_prefetch = 0 : i64, scratch_operands = 1 : i64, tpu.core_type = #tpu.core_type<tc>, window_params = [{transform_indices = @transform_0, window_bounds = array<i64: 8, 1024>}, {transform_indices = @transform_1, window_bounds = array<i64: 1024, 8>}, {pipeline_mode = #tpu.pipeline_mode<synchronous>, transform_indices = @transform_2, window_bounds = array<i64: 8, 128>}, {pipeline_mode = #tpu.pipeline_mode<synchronous>, transform_indices = @transform_3, window_bounds = array<i64: 1, 128>}, {transform_indices = @transform_4, window_bounds = array<i64: 8, 128>}]} {
    %c0_i32 = arith.constant 0 : i32
    %0 = arith.cmpi eq, %arg1, %c0_i32 : i32
    %1 = arith.extui %0 : i1 to i32
    %c0_i32_0 = arith.constant 0 : i32
    %2 = arith.cmpi ne, %1, %c0_i32_0 : i32
    scf.if %2 {
      %cst_10 = arith.constant 0.000000e+00 : f32
      %12 = vector.broadcast %cst_10 : f32 to vector<8x8xf32>
      %c0_11 = arith.constant 0 : index
      %c0_12 = arith.constant 0 : index
      %13 = vector.load %arg7[%c0_11, %c0_12] : memref<8x8xf32, #tpu.memory_space<vmem>>, vector<8x8xf32>
      tpu.vector_store %arg7[%c0_11, %c0_12], %12 {strides = array<i32>} : memref<8x8xf32, #tpu.memory_space<vmem>>, vector<8x8xf32>,
    } else {
    }
    %c0 = arith.constant 0 : index
    %c0_1 = arith.constant 0 : index
    %3 = vector.load %arg7[%c0, %c0_1] : memref<8x8xf32, #tpu.memory_space<vmem>>, vector<8x8xf32>
    %c0_2 = arith.constant 0 : index
    %c0_3 = arith.constant 0 : index
    %4 = vector.load %arg2[%c0_2, %c0_3] : memref<8x1024xbf16, #tpu.memory_space<vmem>>, vector<8x1024xbf16>
    %c0_4 = arith.constant 0 : index
    %c0_5 = arith.constant 0 : index
    %5 = vector.load %arg3[%c0_4, %c0_5] : memref<1024x8xbf16, #tpu.memory_space<vmem>>, vector<1024x8xbf16>
    %cst = arith.constant dense<0.000000e+00> : vector<8x8xf32>
    %6 = tpu.matmul %4, %5, %cst {dimension_numbers = #tpu.dot_dimension_numbers<[1], [0], [0], [1], [0, 0, 1, 1], [], []>} : vector<8x1024xbf16>, vector<1024x8xbf16>, vector<8x8xf32> -> vector<8x8xf32>
    %7 = arith.addf %3, %6 : vector<8x8xf32>
    %c0_6 = arith.constant 0 : index
    %c0_7 = arith.constant 0 : index
    %8 = vector.load %arg7[%c0_6, %c0_7] : memref<8x8xf32, #tpu.memory_space<vmem>>, vector<8x8xf32>
    tpu.vector_store %arg7[%c0_6, %c0_7], %7 {strides = array<i32>} : memref<8x8xf32, #tpu.memory_space<vmem>>, vector<8x8xf32>,
    %c0_i32_8 = arith.constant 0 : i32
    %9 = arith.cmpi eq, %arg1, %c0_i32_8 : i32
    %10 = arith.extui %9 : i1 to i32
    %c0_i32_9 = arith.constant 0 : i32
    %11 = arith.cmpi ne, %10, %c0_i32_9 : i32
    scf.if %11 {
      %c0_10 = arith.constant 0 : index
      %c0_11 = arith.constant 0 : index
      %12 = vector.load %arg7[%c0_10, %c0_11] : memref<8x8xf32, #tpu.memory_space<vmem>>, vector<8x8xf32>
      %c0_12 = arith.constant 0 : index
      %c0_13 = arith.constant 0 : index
      %13 = vector.load %arg4[%c0_12, %c0_13] : memref<8x128xf32, #tpu.memory_space<vmem>>, vector<8x128xf32>
      %cst_14 = arith.constant dense<0.000000e+00> : vector<8x128xf32>
      %14 = tpu.matmul %12, %13, %cst_14 {dimension_numbers = #tpu.dot_dimension_numbers<[1], [0], [0], [1], [0, 0, 1, 1], [], []>} : vector<8x8xf32>, vector<8x128xf32>, vector<8x128xf32> -> vector<8x128xf32>
      %c0_15 = arith.constant 0 : index
      %c0_16 = arith.constant 0 : index
      %15 = vector.load %arg5[%c0_15, %c0_16] : memref<1x128xf32, #tpu.memory_space<vmem>>, vector<1x128xf32>
      %16 = vector.broadcast %15 : vector<1x128xf32> to vector<8x128xf32>
      %17 = arith.addf %14, %16 : vector<8x128xf32>
      %cst_17 = arith.constant 0.000000e+00 : f32
      %18 = vector.broadcast %cst_17 : f32 to vector<8x128xf32>
      %19 = arith.maximumf %17, %18 : vector<8x128xf32>
      %c0_18 = arith.constant 0 : index
      %c0_19 = arith.constant 0 : index
      %20 = vector.load %arg6[%c0_18, %c0_19] : memref<8x128xf32, #tpu.memory_space<vmem>>, vector<8x128xf32>
      tpu.vector_store %arg6[%c0_18, %c0_19], %19 {strides = array<i32>} : memref<8x128xf32, #tpu.memory_space<vmem>>, vector<8x128xf32>,
    } else {
    }
    return
  }
  func.func @transform_0(%arg0: i32, %arg1: i32) -> (i32, i32) {
    %c0_i32 = arith.constant 0 : i32
    return %arg0, %arg1 : i32, i32
  }
  func.func @transform_1(%arg0: i32, %arg1: i32) -> (i32, i32) {
    %c0_i32 = arith.constant 0 : i32
    %c0_i32_0 = arith.constant 0 : i32
    return %arg1, %c0_i32 : i32, i32
  }
  func.func @transform_2(%arg0: i32, %arg1: i32) -> (i32, i32) {
    %c0_i32 = arith.constant 0 : i32
    %c0_i32_0 = arith.constant 0 : i32
    %c0_i32_1 = arith.constant 0 : i32
    return %c0_i32, %c0_i32_0 : i32, i32
  }
  func.func @transform_3(%arg0: i32, %arg1: i32) -> (i32, i32) {
    %c0_i32 = arith.constant 0 : i32
    %c0_i32_0 = arith.constant 0 : i32
    %c0_i32_1 = arith.constant 0 : i32
    return %c0_i32, %c0_i32_0 : i32, i32
  }
  func.func @transform_4(%arg0: i32, %arg1: i32) -> (i32, i32) {
    %c0_i32 = arith.constant 0 : i32
    %c0_i32_0 = arith.constant 0 : i32
    return %arg0, %c0_i32 : i32, i32
  }
}

</mosaic_0001>

<bundles_post_ra>
// kernel: lora_linear_forward.1
= control target key start
LH: loop header
LB: loop body
LE: loop exit
PB: predicated region body
PF: predicated region fallthrough
CT: control target
= control target key end

     0   :  { %vm22_vm0 = vcmask 64512   ;;  %vm1067_vm1 = vmmov 0   ;;  %s1309_s1 = inlined_call_operand.vmem [shape: bf16[1024,8], index: 1, kind: input, shape index: {}]   ;;  %s1310_s0 = inlined_call_operand.vmem [shape: bf16[8,1024], index: 0, kind: input, shape index: {}]   ;;  %s1311_s2 = inlined_call_operand.vmem [shape: f32[8,128], index: 2, kind: input, shape index: {}]   ;;  %s1312_s3 = inlined_call_operand.vmem [shape: f32[1,128], index: 3, kind: input, shape index: {}]   ;;  %s1313_s4 = inlined_call_operand.vmem [shape: f32[8,128], index: 4, kind: output, shape index: {}]  }
   0x1   :  { %v994_v0 = vld [vmem:[%s1309_s1 + $0x78] sm:$0xff]   ;;  %v998_v4 = vld [vmem:[%s1309_s1 + $0x70] sm:$0xff]   ;;  %v1002_v8 = vld [vmem:[%s1309_s1 + $0x68] sm:$0xff]  }
   0x2   :  { %v995_v1 = vld [vmem:[%s1309_s1 + $0xf8] sm:$0xff]   ;;  %897 = vmatprep.subr.bf16.mxu0 %v994_v0  ;;  %v999_v5 = vld [vmem:[%s1309_s1 + $0xf0] sm:$0xff]   ;;  %v1003_v9 = vld [vmem:[%s1309_s1 + $0xe8] sm:$0xff]  }
   0x3   :  { %v996_v2 = vld [vmem:[%s1309_s1 + $0x38] sm:$0xff]   ;;  %919 = vmatprep.subr.bf16.mxu1 %v995_v1  ;;  %v1000_v6 = vld [vmem:[%s1309_s1 + $0x30] sm:$0xff]   ;;  %v1004_v10 = vld [vmem:[%s1309_s1 + $0x28] sm:$0xff]  }
   0x4   :  { %v997_v3 = vld [vmem:[%s1309_s1 + $0xb8] sm:$0xff]   ;;  %898 = vmatpush3.bf16.msra.mxu0 %v996_v2  ;;  %v1001_v7 = vld [vmem:[%s1309_s1 + $0xb0] sm:$0xff]   ;;  %v1005_v11 = vld [vmem:[%s1309_s1 + $0xa8] sm:$0xff]  }
   0x5   :  { %920 = vmatpush3.bf16.msra.mxu1 %v997_v3  ;;  %899 = vmatprep.subr.bf16.mxu0 %v998_v4  ;;  %v1006_v12 = vld [vmem:[%s1309_s1 + $0x60] sm:$0xff]   ;;  %v1010_v16 = vld [vmem:[%s1309_s1 + $0x58] sm:$0xff]   ;;  %v1014_v20 = vld [vmem:[%s1309_s1 + $0x50] sm:$0xff]  }
   0x6   :  { %921 = vmatprep.subr.bf16.mxu1 %v999_v5  ;;  %v1007_v13 = vld [vmem:[%s1309_s1 + $0xe0] sm:$0xff]   ;;  %v1011_v17 = vld [vmem:[%s1309_s1 + $0xd8] sm:$0xff]   ;;  %v1015_v21 = vld [vmem:[%s1309_s1 + $0xd0] sm:$0xff]  }
   0x7   :  { %v1008_v14 = vld [vmem:[%s1309_s1 + $0x20] sm:$0xff]   ;;  %v1012_v18 = vld [vmem:[%s1309_s1 + $0x18] sm:$0xff]   ;;  %v1016_v22 = vld [vmem:[%s1309_s1 + $0x10] sm:$0xff]  }
   0x8   :  { %900 = vmatpush3.bf16.msra.mxu0 %v1000_v6  ;;  %v1009_v15 = vld [vmem:[%s1309_s1 + $0xa0] sm:$0xff]   ;;  %v1013_v19 = vld [vmem:[%s1309_s1 + $0x98] sm:$0xff]   ;;  %v1017_v23 = vld [vmem:[%s1309_s1 + $0x90] sm:$0xff]  }
   0x9   :  { %922 = vmatpush3.bf16.msra.mxu1 %v1001_v7  ;;  %901 = vmatprep.subr.bf16.mxu0 %v1002_v8  ;;  %v1018_v24 = vld [vmem:[%s1309_s1 + $0x48] sm:$0xff]   ;;  %v1022_v28 = vld [vmem:[%s1309_s1 + $0x40] sm:$0xff]   ;;  %v1030_v38 = vld [vmem:[%s1309_s1 + $0x178] sm:$0xff]  }
   0xa   :  { %923 = vmatprep.subr.bf16.mxu1 %v1003_v9  ;;  %v1019_v25 = vld [vmem:[%s1309_s1 + $0xc8] sm:$0xff]   ;;  %v1023_v29 = vld [vmem:[%s1309_s1 + $0xc0] sm:$0xff]   ;;  %v1031_v39 = vld [vmem:[%s1309_s1 + $0x1f8] sm:$0xff]  }
   0xb   :  { %v1020_v26 = vld [vmem:[%s1309_s1 + $0x8] sm:$0xff]   ;;  %v1024_v30 = vld [vmem:[%s1309_s1] sm:$0xff]   ;;  %v1032_v40 = vld [vmem:[%s1309_s1 + $0x138] sm:$0xff]  }
   0xc   :  { %902 = vmatpush3.bf16.msra.mxu0 %v1004_v10  ;;  %v1021_v27 = vld [vmem:[%s1309_s1 + $0x88] sm:$0xff]   ;;  %v1025_v31 = vld [vmem:[%s1309_s1 + $0x80] sm:$0xff]   ;;  %v1033_v41 = vld [vmem:[%s1309_s1 + $0x1b8] sm:$0xff]  }
   0xd   :  { %924 = vmatpush3.bf16.msra.mxu1 %v1005_v11  ;;  %903 = vmatprep.subr.bf16.mxu0 %v1006_v12  ;;  %v25_v32 = vld [vmem:[%s1310_s0] sm:$0xff]  ;;  %v26_v33 = vld [vmem:[%s1310_s0 + $0x8] sm:$0xff]  ;;  %v1034_v42 = vld [vmem:[%s1309_s1 + $0x170] sm:$0xff]   ;;  %v1066_v12 = vmov 0.0  }
   0xe   :  { %925 = vmatprep.subr.bf16.mxu1 %v1007_v13  ;;  %v823_v34 = vcombine.low %v25_v32, %v25_v32  ;;  %v824_v35 = vcombine.high %v25_v32, %v25_v32  ;;  %v825_v36 = vcombine.low %v26_v33, %v26_v33  ;;  %v826_v37 = vcombine.high %v26_v33, %v26_v33  ;;  %v1035_v43 = vld [vmem:[%s1309_s1 + $0x1f0] sm:$0xff]   ;;  %v1038_v46 = vld [vmem:[%s1309_s1 + $0x168] sm:$0xff]   ;;  %v1042_v50 = vld [vmem:[%s1309_s1 + $0x160] sm:$0xff]  }
   0xf   :  { %v1036_v44 = vld [vmem:[%s1309_s1 + $0x130] sm:$0xff]   ;;  %v1039_v47 = vld [vmem:[%s1309_s1 + $0x1e8] sm:$0xff]   ;;  %v1043_v51 = vld [vmem:[%s1309_s1 + $0x1e0] sm:$0xff]   ;;  %23 = vst.msk [vmem:[#allocation2] sm:$0xff] %vm22_vm0, %v1066_v12 }
  0x10   :  { %904 = vmatpush3.bf16.msra.mxu0 %v1008_v14  ;;  %601 = vmatprep.mubr.bf16.mxu0 %v824_v35  ;;  %v1037_v45 = vld [vmem:[%s1309_s1 + $0x1b0] sm:$0xff]   ;;  %v1040_v48 = vld [vmem:[%s1309_s1 + $0x128] sm:$0xff]   ;;  %v1044_v52 = vld [vmem:[%s1309_s1 + $0x120] sm:$0xff]  }
  0x11   :  { %926 = vmatpush3.bf16.msra.mxu1 %v1009_v15  ;;  %905 = vmatprep.subr.bf16.mxu0 %v1010_v16  ;;  %v1041_v49 = vld [vmem:[%s1309_s1 + $0x1a8] sm:$0xff]   ;;  %v1045_v53 = vld [vmem:[%s1309_s1 + $0x1a0] sm:$0xff]   ;;  %v1046_v54 = vld [vmem:[%s1309_s1 + $0x158] sm:$0xff]  }
  0x12   :  { %927 = vmatprep.subr.bf16.mxu1 %v1011_v17  ;;  %641 = vmatprep.mubr.bf16.mxu1 %v826_v37  ;;  %v1047_v55 = vld [vmem:[%s1309_s1 + $0x1d8] sm:$0xff]   ;;  %v1050_v58 = vld [vmem:[%s1309_s1 + $0x150] sm:$0xff]   ;;  %v1054_v62 = vld [vmem:[%s1309_s1 + $0x148] sm:$0xff]  }
  0x13   :  { %v1048_v56 = vld [vmem:[%s1309_s1 + $0x118] sm:$0xff]   ;;  %v1051_v59 = vld [vmem:[%s1309_s1 + $0x1d0] sm:$0xff]   ;;  %v1055_v63 = vld [vmem:[%s1309_s1 + $0x1c8] sm:$0xff]  }
  0x14   :  { %906 = vmatpush3.bf16.msra.mxu0 %v1012_v18  ;;  %v1049_v57 = vld [vmem:[%s1309_s1 + $0x198] sm:$0xff]   ;;  %v1052_v60 = vld [vmem:[%s1309_s1 + $0x110] sm:$0xff]   ;;  %v1056_v0 = vld [vmem:[%s1309_s1 + $0x108] sm:$0xff]  }
  0x15   :  { %928 = vmatpush3.bf16.msra.mxu1 %v1013_v19  ;;  %907 = vmatprep.subr.bf16.mxu0 %v1014_v20  ;;  %v1053_v61 = vld [vmem:[%s1309_s1 + $0x190] sm:$0xff]   ;;  %v1057_v1 = vld [vmem:[%s1309_s1 + $0x188] sm:$0xff]   ;;  %v1058_v2 = vld [vmem:[%s1309_s1 + $0x140] sm:$0xff]  }
  0x16   :  { %929 = vmatprep.subr.bf16.mxu1 %v1015_v21  ;;  %v1059_v3 = vld [vmem:[%s1309_s1 + $0x1c0] sm:$0xff]   ;;  %v27_v6 = vld [vmem:[%s1310_s0 + $0x10] sm:$0xff]  ;;  %v28_v9 = vld [vmem:[%s1310_s0 + $0x18] sm:$0xff] }
  0x17   :  { %v1060_v4 = vld [vmem:[%s1309_s1 + $0x100] sm:$0xff]   ;;  %v827_v7 = vcombine.low %v27_v6, %v27_v6  ;;  %v828_v8 = vcombine.high %v27_v6, %v27_v6  ;;  %v829_v10 = vcombine.low %v28_v9, %v28_v9  ;;  %v830_v11 = vcombine.high %v28_v9, %v28_v9 }
  0x18   :  { %908 = vmatpush3.bf16.msra.mxu0 %v1016_v22  ;;  %v1061_v5 = vld [vmem:[%s1309_s1 + $0x180] sm:$0xff]  }
  0x19   :  { %930 = vmatpush3.bf16.msra.mxu1 %v1017_v23  ;;  %909 = vmatprep.subr.bf16.mxu0 %v1018_v24  ;;  %v736_v13 = vld [vmem:[%s1311_s2] sm:$0xff] }
  0x1a   :  { %931 = vmatprep.subr.bf16.mxu1 %v1019_v25 }
  0x1c   :  { %910 = vmatpush3.bf16.msra.mxu0 %v1020_v26 }
  0x1d   :  { %932 = vmatpush3.bf16.msra.mxu1 %v1021_v27  ;;  %911 = vmatprep.subr.bf16.mxu0 %v1022_v28 }
  0x1e   :  { %933 = vmatprep.subr.bf16.mxu1 %v1023_v29 }
  0x20   :  { %912 = vmatpush3.bf16.msra.mxu0 %v1024_v30 }
  0x21   :  { %934 = vmatpush3.bf16.msra.mxu1 %v1025_v31  ;;  %941 = vmatprep.subr.bf16.mxu0 %v1030_v38 }
  0x22   :  { %963 = vmatprep.subr.bf16.mxu1 %v1031_v39 }
  0x23   :  { %602 = vmatmul.mubr.bf16.vlgmr.msra.gmra.mxu0 %v823_v34 }
  0x24   :  { %642 = vmatmul.mubr.bf16.vlgmr.msra.gmra.mxu1 %v825_v36  ;;  %942 = vmatpush3.bf16.msra.mxu0 %v1032_v40  ;;  %v24_v36 = vld [vmem:[#allocation2] sm:$0xff] }
  0x25   :  { %964 = vmatpush3.bf16.msra.mxu1 %v1033_v41  ;;  %943 = vmatprep.subr.bf16.mxu0 %v1034_v42  ;;  %v895_v40 = vld [vmem:[%s1312_s3] ss:$0 sm:$0xff] }
  0x26   :  { %965 = vmatprep.subr.bf16.mxu1 %v1035_v43  ;;  %681 = vmatprep.mubr.bf16.mxu0 %v828_v8 }
  0x27   :  { %721 = vmatprep.mubr.bf16.mxu1 %v830_v11 }
  0x28   :  { %944 = vmatpush3.bf16.msra.mxu0 %v1036_v44 }
  0x29   :  { %966 = vmatpush3.bf16.msra.mxu1 %v1037_v45  ;;  %945 = vmatprep.subr.bf16.mxu0 %v1038_v46 }
  0x2a   :  { %967 = vmatprep.subr.bf16.mxu1 %v1039_v47 }
  0x2c   :  { %946 = vmatpush3.bf16.msra.mxu0 %v1040_v48 }
  0x2d   :  { %968 = vmatpush3.bf16.msra.mxu1 %v1041_v49  ;;  %947 = vmatprep.subr.bf16.mxu0 %v1042_v50 }
  0x2e   :  { %969 = vmatprep.subr.bf16.mxu1 %v1043_v51 }
  0x30   :  { %948 = vmatpush3.bf16.msra.mxu0 %v1044_v52 }
  0x31   :  { %970 = vmatpush3.bf16.msra.mxu1 %v1045_v53  ;;  %949 = vmatprep.subr.bf16.mxu0 %v1046_v54 }
  0x32   :  { %971 = vmatprep.subr.bf16.mxu1 %v1047_v55 }
  0x34   :  { %950 = vmatpush3.bf16.msra.mxu0 %v1048_v56 }
  0x35   :  { %972 = vmatpush3.bf16.msra.mxu1 %v1049_v57  ;;  %951 = vmatprep.subr.bf16.mxu0 %v1050_v58 }
  0x36   :  { %973 = vmatprep.subr.bf16.mxu1 %v1051_v59 }
  0x38   :  { %952 = vmatpush3.bf16.msra.mxu0 %v1052_v60 }
  0x39   :  { %974 = vmatpush3.bf16.msra.mxu1 %v1053_v61  ;;  %953 = vmatprep.subr.bf16.mxu0 %v1054_v62 }
  0x3a   :  { %975 = vmatprep.subr.bf16.mxu1 %v1055_v63 }
  0x3c   :  { %954 = vmatpush3.bf16.msra.mxu0 %v1056_v0 }
  0x3d   :  { %976 = vmatpush3.bf16.msra.mxu1 %v1057_v1  ;;  %955 = vmatprep.subr.bf16.mxu0 %v1058_v2 }
  0x3e   :  { %977 = vmatprep.subr.bf16.mxu1 %v1059_v3 }
  0x40   :  { %956 = vmatpush3.bf16.msra.mxu0 %v1060_v4 }
  0x41   :  { %978 = vmatpush3.bf16.msra.mxu1 %v1061_v5  ;;  %987 = vmatprep.subr.mxu0 %v1066_v12 }
  0x43   :  { %682 = vmatmul.mubr.bf16.vlgmr.msra.gmra.mxu0 %v827_v7 }
  0x44   :  { %722 = vmatmul.mubr.bf16.vlgmr.msra.gmra.mxu1 %v829_v10  ;;  %989 = vmatprep.mubr.msk.f32.mxu0 %vm1067_vm1, %v1066_v12 }
  0x45   :  { %988 = vmatpush3.msra.mxu0 %v736_v13 }
  0xe3   :  { %v913_v14 = vpop.f32.mrf.mxu0 }
  0xe4   :  { %v935_v15 = vpop.f32.mrf.mxu1 }
  0xe5   :  { %v914_v16 = vpop.f32.mrf.mxu0 }
  0xe6   :  { %v936_v17 = vpop.f32.mrf.mxu1  ;;  %v915_v22 = vadd.f32 %v914_v16, %v913_v14 }
  0xe7   :  { %v916_v18 = vpop.f32.mrf.mxu0  ;;  %v937_v23 = vadd.f32 %v936_v17, %v935_v15 }
  0xe8   :  { %v938_v19 = vpop.f32.mrf.mxu1 }
  0xe9   :  { %v917_v20 = vpop.f32.mrf.mxu0  ;;  %v644_v28 = vadd.f32 %v937_v23, %v915_v22 }
  0xea   :  { %v939_v21 = vpop.f32.mrf.mxu1 }
 0x103   :  { %v957_v24 = vpop.f32.mrf.mxu0 }
 0x104   :  { %v979_v25 = vpop.f32.mrf.mxu1 }
 0x105   :  { %v958_v26 = vpop.f32.mrf.mxu0 }
 0x106   :  { %v980_v27 = vpop.f32.mrf.mxu1  ;;  %v959_v29 = vadd.f32 %v958_v26, %v957_v24 }
 0x107   :  { %v960_v30 = vpop.f32.mrf.mxu0  ;;  %v981_v33 = vadd.f32 %v980_v27, %v979_v25 }
 0x108   :  { %v982_v31 = vpop.f32.mrf.mxu1  ;;  %v684_v32 = vadd.f32 %v959_v29, %v644_v28 }
 0x109   :  { %v961_v34 = vpop.f32.mrf.mxu0 }
 0x10a   :  { %v983_v35 = vpop.f32.mrf.mxu1  ;;  %v724_v37 = vadd.f32 %v981_v33, %v684_v32 }
 0x10c   :  { %v729_v38 = vadd.f32 %v724_v37, %v24_v36 }
 0x10e   :  { %731 = vst.msk [vmem:[#allocation2] sm:$0xff] %vm22_vm0, %v729_v38 }
 0x115   :  { %v735_v39 = vld [vmem:[#allocation2] sm:$0xff] }
 0x116   :  { %990 = vmatmul.mubr.msk.f32.vlgmr.msra.gmra.mxu0 %vm22_vm0, %v735_v39 }
 0x1d6   :  { %v813_v41 = vpop.f32.mrf.mxu0 }
 0x1d7   :  { %v814_v42 = vadd.f32 %v895_v40, %v813_v41 }
 0x1d8   :  { %v991_v43 = vpop.f32.mrf.mxu0 }
 0x1d9   :  { %v817_v44 = vmax.f32 %v814_v42, 0.0 }
 0x1db   :  { %818 = vst [vmem:[%s1313_s4] sm:$0xff] %v817_v44 }

</bundles_post_ra>
